<compile_context>
chip_gen: v7x
topology: tpu7x:2x2x1
jax: 0.10.0
libtpu: 0.0.40
codegen_flags: <defaults>
</compile_context>

<pallas_src>
import jax
import jax.numpy as jnp
from jax.experimental import pallas as pl
from jax.experimental.pallas import tpu as pltpu


def _spe_kernel(x_ref, w_ref, m_ref, o_ref):
    # x_ref: (TN, 1) pre-scaled positions
    # w_ref: (1, dim) frequency row tiled twice across the lane dim
    # m_ref: (1, dim) selector row: 1.0 for the sin half, 0.0 for the cos half
    arg = x_ref[...] * w_ref[...]            # (TN, dim) broadcast outer product
    s = jnp.sin(arg)
    c = jnp.cos(arg)
    # Full-lane-width blend (pure VPU); single unmasked store per output vreg.
    o_ref[...] = c + m_ref[...] * (s - c)


def _round_up(x, m):
    return (x + m - 1) // m * m


def spe_forward(x, dim=128, max_positions=10000, scale=32, tile_n=None):
    """Equivalent of SPE(dim, max_positions, scale).forward(x)."""
    assert dim % 2 == 0, "dim must be even"
    half = dim // 2

    # Flatten and apply scale exactly like the reference (x*scale first).
    x_flat = jnp.reshape(x, (-1,)).astype(jnp.float32) * jnp.float32(scale)
    n = x_flat.shape[0]

    # Tile selection: big tiles amortize per-step pipeline overhead; keep at
    # least 2 grid steps when N allows so both v7x TensorCores get work.
    if tile_n is None:
        tile_n = 1024
        if n < 2 * tile_n:
            tile_n = max(8, _round_up(_round_up(n, 2) // 2, 8))

    n_pad = _round_up(n, tile_n)
    if n_pad != n:
        x_flat = jnp.pad(x_flat, (0, n_pad - n))
    x_col = x_flat[:, None]                                   # (n_pad, 1)

    # One-time constants (plain JAX): frequency row tiled across both halves
    # of the lane dim, plus the sin/cos selector row.
    freqs = jnp.arange(half, dtype=jnp.float32)
    w = (1.0 / max_positions) ** (2.0 * freqs / dim)
    w_row = jnp.tile(w, 2)[None, :]                           # (1, dim)
    m_row = jnp.concatenate(
        [jnp.ones((half,), jnp.float32), jnp.zeros((half,), jnp.float32)]
    )[None, :]                                                # (1, dim)

    grid = (n_pad // tile_n,)
    out = pl.pallas_call(
        _spe_kernel,
        out_shape=jax.ShapeDtypeStruct((n_pad, dim), jnp.float32),
        grid_spec=pltpu.PrefetchScalarGridSpec(
            num_scalar_prefetch=0,
            grid=grid,
            in_specs=[
                pl.BlockSpec((tile_n, 1), lambda i: (i, 0)),   # x column tile
                pl.BlockSpec((1, dim), lambda i: (0, 0)),      # freq row, resident
                pl.BlockSpec((1, dim), lambda i: (0, 0)),      # selector, resident
            ],
            out_specs=pl.BlockSpec((tile_n, dim), lambda i: (i, 0)),
        ),
        compiler_params=pltpu.CompilerParams(
            dimension_semantics=("parallel",)
        ),
    )(x_col, w_row, m_row)

    if n_pad != n:
        out = out[:n]
    return out


def spe_reference(x, dim=128, max_positions=10000, scale=32):
    """Pure-JAX reference mirroring the PyTorch forward exactly."""
    x = jnp.reshape(x, (-1,)).astype(jnp.float32) * scale
    freqs = jnp.arange(dim // 2, dtype=jnp.float32)
    w = (1.0 / max_positions) ** (2.0 * freqs / dim)
    arg = x[:, None] * w[None, :]
    return jnp.concatenate([jnp.sin(arg), jnp.cos(arg)], axis=-1)


if __name__ == "__main__":
    key = jax.random.PRNGKey(0)
    # Timestep-like input, e.g. a batch of noise levels: shape (2, 16) -> N = 32.
    x = jax.random.uniform(key, (2, 16), dtype=jnp.float32) * 10.0

    out = spe_forward(x, dim=128, max_positions=10000, scale=32)
    out = jax.block_until_ready(out)

    ref = spe_reference(x, dim=128, max_positions=10000, scale=32)
    assert out.shape == (32, 128), out.shape
    # Exact sin/cos in-kernel: only residual difference is the transcendental
    # lowering path (Mosaic vs XLA), a few ULPs.
    assert jnp.allclose(out, ref, atol=5e-4, rtol=1e-4), "mismatch vs reference"

    # Also exercise a larger, non-tile-multiple N to cover the padding path.
    x2 = jax.random.uniform(jax.random.PRNGKey(1), (3, 7, 23), dtype=jnp.float32) * 10.0
    out2 = jax.block_until_ready(spe_forward(x2))
    ref2 = spe_reference(x2)
    assert out2.shape == ref2.shape, (out2.shape, ref2.shape)
    assert jnp.allclose(out2, ref2, atol=5e-4, rtol=1e-4), "mismatch vs reference (padded)"

    print("KERNEL_OK")
</pallas_src>

<mosaic_0001>
module attributes {stable_mosaic.version = 11 : i64} {
  func.func @_spe_kernel(%arg0: i32, %arg1: memref<16x1xf32, #tpu.memory_space<vmem>>, %arg2: memref<1x128xf32, #tpu.memory_space<vmem>>, %arg3: memref<1x128xf32, #tpu.memory_space<vmem>>, %arg4: memref<16x128xf32, #tpu.memory_space<vmem>>) attributes {dimension_semantics = [#tpu.dimension_semantics<parallel>], iteration_bounds = array<i64: 2>, scalar_prefetch = 0 : i64, scratch_operands = 0 : i64, tpu.core_type = #tpu.core_type<tc>, window_params = [{transform_indices = @transform_0, window_bounds = array<i64: 16, 1>}, {pipeline_mode = #tpu.pipeline_mode<synchronous>, transform_indices = @transform_1, window_bounds = array<i64: 1, 128>}, {pipeline_mode = #tpu.pipeline_mode<synchronous>, transform_indices = @transform_2, window_bounds = array<i64: 1, 128>}, {transform_indices = @transform_3, window_bounds = array<i64: 16, 128>}]} {
    %c0 = arith.constant 0 : index
    %c0_0 = arith.constant 0 : index
    %0 = vector.load %arg1[%c0, %c0_0] : memref<16x1xf32, #tpu.memory_space<vmem>>, vector<16x1xf32>
    %c0_1 = arith.constant 0 : index
    %c0_2 = arith.constant 0 : index
    %1 = vector.load %arg2[%c0_1, %c0_2] : memref<1x128xf32, #tpu.memory_space<vmem>>, vector<1x128xf32>
    %2 = vector.broadcast %0 : vector<16x1xf32> to vector<16x128xf32>
    %3 = vector.broadcast %1 : vector<1x128xf32> to vector<16x128xf32>
    %4 = arith.mulf %2, %3 : vector<16x128xf32>
    %5 = math.sin %4 : vector<16x128xf32>
    %6 = math.cos %4 : vector<16x128xf32>
    %c0_3 = arith.constant 0 : index
    %c0_4 = arith.constant 0 : index
    %7 = vector.load %arg3[%c0_3, %c0_4] : memref<1x128xf32, #tpu.memory_space<vmem>>, vector<1x128xf32>
    %8 = arith.subf %5, %6 : vector<16x128xf32>
    %9 = vector.broadcast %7 : vector<1x128xf32> to vector<16x128xf32>
    %10 = arith.mulf %9, %8 : vector<16x128xf32>
    %11 = arith.addf %6, %10 : vector<16x128xf32>
    %c0_5 = arith.constant 0 : index
    %c0_6 = arith.constant 0 : index
    %12 = vector.load %arg4[%c0_5, %c0_6] : memref<16x128xf32, #tpu.memory_space<vmem>>, vector<16x128xf32>
    tpu.vector_store %arg4[%c0_5, %c0_6], %11 {strides = array<i32>} : memref<16x128xf32, #tpu.memory_space<vmem>>, vector<16x128xf32>,
    return
  }
  func.func @transform_0(%arg0: i32) -> (i32, i32) {
    %c0_i32 = arith.constant 0 : i32
    %c0_i32_0 = arith.constant 0 : i32
    return %arg0, %c0_i32 : i32, i32
  }
  func.func @transform_1(%arg0: i32) -> (i32, i32) {
    %c0_i32 = arith.constant 0 : i32
    %c0_i32_0 = arith.constant 0 : i32
    %c0_i32_1 = arith.constant 0 : i32
    return %c0_i32, %c0_i32_0 : i32, i32
  }
  func.func @transform_2(%arg0: i32) -> (i32, i32) {
    %c0_i32 = arith.constant 0 : i32
    %c0_i32_0 = arith.constant 0 : i32
    %c0_i32_1 = arith.constant 0 : i32
    return %c0_i32, %c0_i32_0 : i32, i32
  }
  func.func @transform_3(%arg0: i32) -> (i32, i32) {
    %c0_i32 = arith.constant 0 : i32
    %c0_i32_0 = arith.constant 0 : i32
    return %arg0, %c0_i32 : i32, i32
  }
}

</mosaic_0001>

<bundles_post_ra>
// kernel: tpu_custom_call.1
= control target key start
LH: loop header
LB: loop body
LE: loop exit
PB: predicated region body
PF: predicated region fallthrough
CT: control target
= control target key end

     0   :  { %8 = vsyncpa [#allocation3], 0  ;;  %s1060_s0 = inlined_call_operand.vmem [shape: f32[32,1], index: 0, kind: input, shape index: {}]   ;;  %s1061_s1 = inlined_call_operand.vmem [shape: f32[1,128], index: 1, kind: input, shape index: {}]   ;;  %s1062_s2 = inlined_call_operand.vmem [shape: f32[1,128], index: 2, kind: input, shape index: {}]   ;;  %s1063_s3 = inlined_call_operand.hbm [shape: f32[32,128], index: 3, kind: output, shape index: {}]  }
   0x1   :  { %10 = vsyncpa [#allocation3 + $0x1], 0  ;;  %s888_s12 = smov 0   ;;  %s890_s13 = smov 0  }
   0x2   :  { %s892_s14 = smov 0   ;;  %s894_s15 = smov 0  }
   0x3 LB: > { %s909_s16 = sadd.s32 4294967295, %s856_s15   ;;  %s698_s17 = sadd.s32 4294967294, %s856_s15   ;;  %s856_s15 = sphi %s894_s15, %s1069_s15   ;;  %s852_s14 = sphi %s892_s14, %s1068_s14   ;;  %s848_s13 = sphi %s890_s13, %s1067_s13   ;;  %s844_s12 = sphi %s888_s12, %s1066_s12  }
   0x4   : > { %s913_s18 = sadd.s32 1, %s856_s15   ;;  %s91_s19 = sadd.s32 1, %s852_s14 }
   0x5   : > { %s88_s20 = ssub.s32 %s856_s15, %s913_s18  ;;  %p101_p0 = scmp.ne.s32.totalorder %s852_s14, %s848_s13 }
   0x6   : > { %p89_p1 = scmp.eq.s32.totalorder %s88_s20, 0  ;;  %p102_p2 = scmp.eq.s32.totalorder %s909_s16, 1 }
   0x7   : > { %p107_p3 = scmp.ne.s32.totalorder %s848_s13, %s844_s12  ;;  %p108_p4 = scmp.eq.s32.totalorder %s698_s17, 1 }
   0x8   : > { %s924_s21 = scalar_select %p89_p1, %s852_s14, %s91_s19  }
   0x9   : > { %p926_p5 = por %p102_p2, %p101_p0  ;;  %p930_p6 = por %p108_p4, %p107_p3 }
   0xa   : > { %p701_p7 = scmp.ge.s32.totalorder %s856_s15, 1  ;;  %p141_p8 = scmp.lt.s32.totalorder %s856_s15, 3 }
   0xc   : > { %p142_p9 = pnand %p701_p7, %p141_p8 }
   0xd   : > { %s703_s24 = sshll.u32 (!%p142_p9), %s909_s16, 1  ;;  %v858_v0 = vmov (!%p142_p9), 0   ;;  %v705_v3 = vld [vmem:[%s1061_s1] ss:$0 sm:$0xff] (!%p142_p9)  ;;  %v859_v24 = vmov (!%p142_p9), 683565275  }
   0xe   : > { %145 = sbr.rel (%p142_p9) target bundleno = 266 (0x10a), region = 32  ;;  %785 = vset.pattern.permute.xlu0 (!%p142_p9), %v858_v0  ;;  %p166_p10 = scmp.lt.s32.totalorder (!%p142_p9), %s703_s24, 3  ;;  %v860_v28 = vmov (!%p142_p9), 2475754826   ;;  %v861_v30 = vmov (!%p142_p9), 2131351028  }
   0xf   : > { %v862_v32 = vmov (!%p142_p9), 2102212464   ;;  %v863_v34 = vmov (!%p142_p9), 920167782   ;;  %v864_v41 = vmov (!%p142_p9), 1326507024  }
  0x10   : > { %s162_s4 = sand.u32 (!%p142_p9), 1, %s848_s13   ;;  %s728_s9 = sshll.u32 (!%p142_p9), %s909_s16, 8 }
  0x11   : > { %s702_s7 = sshll.u32 (!%p142_p9), %s162_s4, 4  ;;  %s1013_s19 = scalar_lea.hbm (!%p142_p9), %s1063_s3, %s728_s9 }
  0x12   : > { %s164_s8 = scalar_lea.vmem (!%p142_p9), [#allocation2], %s702_s7  ;;  %s1019_s20 = scalar_lea.sflag (!%p142_p9), [#allocation3], %s162_s4 }
  0x13   : > { %s636_s10 = sshll.u32 (!%p142_p9), %s164_s8, 4  ;;  %s865_s16 = smov (!%p142_p9), [#allocation2]   ;;  %s1015_s10 = int_to_ptr.vmem [resolvable:$true] %s636_s10 }
  0x15   : > { %s1071_s24 = smov (!%p166_p10, %s703_s24), 3 }
  0x16   : > { %s704_s25 = sshll.u32 %s1071_s24, 3  ;;  %s794_s24 = scalar_lea.vmem %s1015_s10, 256 }
  0x17   : > { %s169_s28 = scalar_lea.vmem %s1060_s0, %s704_s25  ;;  %p795_p11 = scmp.ne.s32.totalorder %s1015_s10, %s794_s24 }
  0x18   : > { %v172_v1 = vld [vmem:[%s169_s28] sm:$0xff]  ;;  %v173_v2 = vld [vmem:[%s169_s28 + $0x8] sm:$0xff]  ;;  %s798_s25 = sshll.u32 %s865_s16, 4  ;;  %s799_s25 = int_to_ptr.vmem [resolvable:$false] %s798_s25 }
  0x19   : > { %177 = vperm.xlu0 %785, %v172_v1   ;;  %p796_p12 = pnand %p795_p11, %p926_p5  ;;  %s800_s26 = scalar_lea.vmem %s799_s25, 512 }
  0x1a   : > { %p801_p0 = scmp.lt.s32.totalorder %s1015_s10, %s799_s25  ;;  %p802_p1 = scmp.lt.s32.totalorder %s800_s26, %s794_s24 }
  0x1b   : > { %p797_p13 = pneg %p796_p12 }
  0x1c   : > { %p803_p2 = por %p802_p1, %p801_p0 }
  0x1d   : > { %182 = vperm.xlu0 %785, %v173_v2  }
  0x1e   : > { %p804_p3 = pnand %p803_p2, %p797_p13 }
  0x98   : > { %v178_v4 = vpop.permute.xlu0 %177 }
  0x99   : > { %v943_v5 = vmul.f32 %v705_v3, %v178_v4 }
  0x9b   : > { %v193_v6 = vand.u32 2147483647, %v943_v5  ;;  %v196_v7 = vand.u32 2139095040, %v943_v5  ;;  %vm195_vm14 = vcmp.lt.s32.totalorder %v943_v5, 0 }
  0x9c   : > { %v183_v8 = vpop.permute.xlu0 %182 }
  0x9d   : > { %v197_v9 = vshrl.u32 %v196_v7, 23  ;;  %v947_v10 = vmul.f32 %v705_v3, %v183_v8  ;;  %v200_v11 = vand.u32 8388607, %v193_v6  ;;  %vm194_vm15 = vcmp.le.f32.partialorder %v193_v6, 0.7853982 }
  0x9f   : > { %v706_v12 = vadd.s32 4294967169, %v197_v9  ;;  %v300_v13 = vand.u32 2139095040, %v947_v10  ;;  %v201_v15 = vor.u32 8388608, %v200_v11  ;;  %v297_v17 = vand.u32 2147483647, %v947_v10 }
  0xa1   : > { %v203_v14 = vadd.s32 1, %v706_v12  ;;  %v301_v16 = vshrl.u32 %v300_v13, 23  ;;  %v953_v22 = vshll.u32 %v201_v15, 8  ;;  %v304_v26 = vand.u32 8388607, %v297_v17 }
  0xa3   : > { %vm204_vm0 = vcmp.gt.s32.totalorder %v203_v14, 0  ;;  %v710_v19 = vadd.s32 4294967169, %v301_v16  ;;  %v305_v56 = vor.u32 8388608, %v304_v26 }
  0xa4   : > { %v205_v18 = vsel %vm204_vm0, %v203_v14, 0  ;;  %vm299_vm0 = vcmp.lt.s32.totalorder %v947_v10, 0 }
  0xa5   : > { %v206_v20 = vshrl.u32 %v205_v18, 5  ;;  %v207_v21 = vand.u32 31, %v205_v18  ;;  %v307_v27 = vadd.s32 1, %v710_v19  ;;  %v345_v7 = vshll.u32 %v305_v56, 8 }
  0xa7   : > { %v208_v23 = vsub.s32 32, %v207_v21  ;;  %v210_v25 = vshll.u32 %v859_v24, %v207_v21  ;;  %v213_v29 = vshll.u32 %v860_v28, %v207_v21  ;;  %v216_v31 = vshll.u32 %v861_v30, %v207_v21 }
  0xa8   : > { %v219_v33 = vshll.u32 %v862_v32, %v207_v21  ;;  %v222_v35 = vshll.u32 %v863_v34, %v207_v21  ;;  %vm225_vm1 = vcmp.lt.s32.totalorder %v206_v20, 1  ;;  %vm227_vm2 = vcmp.lt.s32.totalorder %v206_v20, 3 }
  0xa9   : > { %v211_v36 = vshrl.u32 %v860_v28, %v208_v23  ;;  %v214_v37 = vshrl.u32 %v861_v30, %v208_v23  ;;  %v217_v38 = vshrl.u32 %v862_v32, %v208_v23  ;;  %v209_v39 = vshrl.u32 %v859_v24, %v208_v23 }
  0xaa   : > { %v220_v40 = vshrl.u32 %v863_v34, %v208_v23  ;;  %v223_v42 = vshrl.u32 %v864_v41, %v208_v23  ;;  %vm308_vm3 = vcmp.gt.s32.totalorder %v307_v27, 0  ;;  %vm228_vm4 = vcmp.lt.s32.totalorder %v206_v20, 4 }
  0xab   : > { %v212_v43 = vor.u32 %v211_v36, %v210_v25  ;;  %v215_v44 = vor.u32 %v214_v37, %v213_v29  ;;  %v218_v45 = vor.u32 %v217_v38, %v216_v31  ;;  %v309_v48 = vsel %vm308_vm3, %v307_v27, 0 }
  0xac   : > { %v221_v46 = vor.u32 %v220_v40, %v219_v33  ;;  %v224_v47 = vor.u32 %v223_v42, %v222_v35  ;;  %vm226_vm5 = vcmp.lt.s32.totalorder %v206_v20, 2  ;;  %v311_v59 = vand.u32 31, %v309_v48 }
  0xad   : > { %v229_v49 = vsel %vm225_vm1, %v209_v39, %v212_v43  ;;  %v230_v50 = vsel %vm228_vm4, %v218_v45, 2102212464  ;;  %v233_v51 = vsel %vm225_vm1, %v212_v43, %v215_v44  ;;  %v237_v52 = vsel %vm225_vm1, %v215_v44, %v218_v45 }
  0xae   : > { %v231_v53 = vsel %vm227_vm2, %v215_v44, %v230_v50  ;;  %v234_v54 = vsel %vm228_vm4, %v221_v46, 920167782  ;;  %v238_v55 = vsel %vm228_vm4, %v224_v47, 1326507024  ;;  %v310_v3 = vshrl.u32 %v309_v48, 5 }
  0xaf   : > { %v235_v57 = vsel %vm227_vm2, %v218_v45, %v234_v54  ;;  %v239_v58 = vsel %vm227_vm2, %v221_v46, %v238_v55  ;;  %v232_v60 = vsel %vm226_vm5, %v229_v49, %v231_v53  ;;  %v312_v4 = vsub.s32 32, %v311_v59 }
  0xb0   : > { %v236_v61 = vsel %vm226_vm5, %v233_v51, %v235_v57  ;;  %v240_v62 = vsel %vm226_vm5, %v237_v52, %v239_v58  ;;  %v248_v8 = vmul.u32 %v953_v22, %v232_v60  ;;  %v314_v9 = vshll.u32 %v859_v24, %v311_v59 }
  0xb1   : > { %v966_v63 = vmul.u32.u64.low %v953_v22, %v240_v62  ;;  %v967_v0 = vmul.u32.u64.high %v953_v22, %v240_v62, %v966_v63  ;;  %v970_v1 = vmul.u32.u64.low %v953_v22, %v236_v61  ;;  %v971_v2 = vmul.u32.u64.high %v953_v22, %v236_v61, %v970_v1 }
  0xb2   : > { %v317_v11 = vshll.u32 %v860_v28, %v311_v59  ;;  %v320_v12 = vshll.u32 %v861_v30, %v311_v59  ;;  %v315_v13 = vshrl.u32 %v860_v28, %v312_v4  ;;  %v318_v14 = vshrl.u32 %v861_v30, %v312_v4 }
  0xb3   : > { %v321_v15 = vshrl.u32 %v862_v32, %v312_v4  ;;  %v323_v16 = vshll.u32 %v862_v32, %v311_v59  ;;  %vm250_vm6 = vc.u32 %v967_v0, %v970_v1  ;;  %v251_v18 = vadd.s32 1, %v971_v2 }
  0xb4   : > { %v324_v19 = vshrl.u32 %v863_v34, %v312_v4  ;;  %v326_v20 = vshll.u32 %v863_v34, %v311_v59  ;;  %v316_v21 = vor.u32 %v315_v13, %v314_v9  ;;  %v319_v23 = vor.u32 %v318_v14, %v317_v11 }
  0xb5   : > { %v322_v25 = vor.u32 %v321_v15, %v320_v12  ;;  %v327_v26 = vshrl.u32 %v864_v41, %v312_v4  ;;  %v252_v22 = vsel %vm250_vm6, %v251_v18, %v971_v2  ;;  %vm329_vm7 = vcmp.lt.s32.totalorder %v310_v3, 1 }
  0xb6   : > { %v325_v27 = vor.u32 %v324_v19, %v323_v16  ;;  %vm332_vm8 = vcmp.lt.s32.totalorder %v310_v3, 4  ;;  %v253_v28 = vadd.s32 %v252_v22, %v248_v8  ;;  %vm331_vm9 = vcmp.lt.s32.totalorder %v310_v3, 3 }
  0xb7   : > { %v328_v29 = vor.u32 %v327_v26, %v326_v20  ;;  %v334_v30 = vsel %vm332_vm8, %v322_v25, 2102212464  ;;  %v313_v31 = vshrl.u32 %v859_v24, %v312_v4  ;;  %v337_v32 = vsel %vm329_vm7, %v316_v21, %v319_v23 }
  0xb8   : > { %v338_v33 = vsel %vm332_vm8, %v325_v27, 920167782  ;;  %v341_v35 = vsel %vm329_vm7, %v319_v23, %v322_v25  ;;  %v254_v36 = vadd.s32 536870912, %v253_v28  ;;  %vm330_vm10 = vcmp.lt.s32.totalorder %v310_v3, 2 }
  0xb9   : > { %v339_v34 = vsel %vm331_vm9, %v322_v25, %v338_v33  ;;  %v342_v37 = vsel %vm332_vm8, %v328_v29, 1326507024  ;;  %v333_v38 = vsel %vm329_vm7, %v313_v31, %v316_v21  ;;  %v335_v39 = vsel %vm331_vm9, %v319_v23, %v334_v30 }
  0xba   : > { %v340_v40 = vsel %vm330_vm10, %v337_v32, %v339_v34  ;;  %v343_v41 = vsel %vm331_vm9, %v325_v27, %v342_v37  ;;  %v255_v42 = vshrl.u32 %v254_v36, 30  ;;  %v336_v48 = vsel %vm330_vm10, %v333_v38, %v335_v39 }
  0xbb   : > { %v344_v43 = vsel %vm330_vm10, %v341_v35, %v343_v41  ;;  %v981_v44 = vmul.u32.u64.low %v345_v7, %v340_v40  ;;  %v982_v45 = vmul.u32.u64.high %v345_v7, %v340_v40, %v981_v44  ;;  %v352_v51 = vmul.u32 %v345_v7, %v336_v48 }
  0xbc   : > { %v984_v46 = vmul.u32.u64.low %v345_v7, %v344_v43  ;;  %v985_v47 = vmul.u32.u64.high %v345_v7, %v344_v43, %v984_v46  ;;  %v256_v24 = vshll.u32 %v255_v42, 30  ;;  %v249_v63 = vadd.s32 %v970_v1, %v967_v0 }
  0xbd   : > { %v355_v50 = vadd.s32 1, %v982_v45  ;;  %v279_v21 = vsub.s32 4, %v255_v42  ;;  %vm298_vm1 = vcmp.le.f32.partialorder %v297_v17, 0.7853982  ;;  %vm285_vm8 = vweird.f32 %v943_v5 }
  0xbe   : > { %v257_v49 = vsub.s32 %v253_v28, %v256_v24  ;;  %vm354_vm11 = vc.u32 %v985_v47, %v981_v44  ;;  %v353_v0 = vadd.s32 %v981_v44, %v985_v47 }
  0xbf   : > { %v356_v53 = vsel %vm354_vm11, %v355_v50, %v982_v45  ;;  %v280_v30 = vsel %vm195_vm14, %v279_v21, %v255_v42 }
  0xc0   : > { %v259_v52 = vsub.s32 0, %v257_v49  ;;  %v357_v54 = vadd.s32 %v356_v53, %v352_v51  ;;  %v282_v35 = vsel %vm194_vm15, 0, %v280_v30 }
  0xc1   : > { %v286_v38 = vadd.s32 3, %v282_v35  ;;  %v494_v41 = vand.u32 3, %v282_v35 }
  0xc2   : > { %v707_v55 = vmin.u32 %v259_v52, %v257_v49  ;;  %v358_v56 = vadd.s32 536870912, %v357_v54 }
  0xc3   : > { %v287_v44 = vand.u32 3, %v286_v38  ;;  %vm499_vm2 = vcmp.eq.s32.totalorder %v494_v41, 2  ;;  %vm496_vm5 = vcmp.eq.s32.totalorder %v494_v41, 0  ;;  %vm495_vm7 = vcmp.lt.s32.totalorder %v494_v41, 2 }
  0xc4   : > { %v261_v57 = vclz %v707_v55  ;;  %v359_v58 = vshrl.u32 %v358_v56, 30 }
  0xc5   : > { %vm292_vm3 = vcmp.eq.s32.totalorder %v287_v44, 2  ;;  %vm289_vm4 = vcmp.eq.s32.totalorder %v287_v44, 0  ;;  %vm288_vm6 = vcmp.lt.s32.totalorder %v287_v44, 2 }
  0xc6   : > { %v708_v59 = vadd.s32 4294967294, %v261_v57  ;;  %v360_v60 = vshll.u32 %v359_v58, 30  ;;  %v383_v40 = vsub.s32 4, %v359_v58 }
  0xc8   : > { %vm709_vm12 = vcmp.lt.s32.totalorder %v708_v59, 0  ;;  %v361_v62 = vsub.s32 %v357_v54, %v360_v60  ;;  %v384_v42 = vsel %vm299_vm0, %v383_v40, %v359_v58  ;;  %v722_v58 = vld [vmem:[%s1062_s2] ss:$0 sm:$0xff] }
  0xc9   : > { %v264_v61 = vsel %vm709_vm12, 0, %v708_v59 }
  0xca   : > { %v265_v2 = vsub.s32 32, %v264_v61  ;;  %v269_v3 = vsub.s32 4294967266, %v264_v61  ;;  %v363_v4 = vsub.s32 0, %v361_v62  ;;  %v266_v7 = vshll.u32 %v257_v49, %v264_v61 }
  0xcb   : > { %v386_v49 = vsel %vm298_vm1, 0, %v384_v42 }
  0xcc   : > { %v267_v8 = vshrl.u32 %v249_v63, %v265_v2  ;;  %v270_v9 = vadd.s32 127, %v269_v3  ;;  %v711_v11 = vmin.u32 %v363_v4, %v361_v62  ;;  %v390_v55 = vadd.s32 3, %v386_v49 }
  0xcd   : > { %v597_v61 = vand.u32 3, %v386_v49 }
  0xce   : > { %v268_v12 = vor.u32 %v267_v8, %v266_v7  ;;  %v271_v13 = vshll.u32 %v270_v9, 23  ;;  %v365_v14 = vclz %v711_v11  ;;  %v391_v60 = vand.u32 3, %v390_v55 }
  0xcf   : > { %vm602_vm10 = vcmp.eq.s32.totalorder %v597_v61, 2  ;;  %vm599_vm12 = vcmp.eq.s32.totalorder %v597_v61, 0 }
  0xd0   : > { %v272_v15 = vor.u32 4788187, %v271_v13  ;;  %v712_v16 = vadd.s32 4294967294, %v365_v14  ;;  %v275_v19 = vcvt.s32.f32 %v268_v12  ;;  %vm396_vm9 = vcmp.eq.s32.totalorder %v391_v60, 2 }
  0xd1   : > { %vm393_vm11 = vcmp.eq.s32.totalorder %v391_v60, 0 }
  0xd2   : > { %v273_v18 = vand.u32 2147483647, %v272_v15  ;;  %vm713_vm13 = vcmp.lt.s32.totalorder %v712_v16, 0 }
  0xd3   : > { %v368_v23 = vsel %vm713_vm13, 0, %v712_v16  ;;  %vm392_vm13 = vcmp.lt.s32.totalorder %v391_v60, 2 }
  0xd4   : > { %v276_v20 = vmul.f32 %v275_v19, %v273_v18  ;;  %v369_v1 = vsub.s32 32, %v368_v23  ;;  %v373_v25 = vsub.s32 4294967266, %v368_v23  ;;  %v370_v22 = vshll.u32 %v361_v62, %v368_v23 }
  0xd6   : > { %v277_v26 = vxor.u32 2147483648, %v276_v20  ;;  %v371_v27 = vshrl.u32 %v353_v0, %v369_v1  ;;  %v374_v28 = vadd.s32 127, %v373_v25 }
  0xd8   : > { %v278_v29 = vsel %vm195_vm14, %v277_v26, %v276_v20  ;;  %v372_v32 = vor.u32 %v371_v27, %v370_v22  ;;  %v375_v33 = vshll.u32 %v374_v28, 23  ;;  %vm598_vm14 = vcmp.lt.s32.totalorder %v597_v61, 2 }
  0xd9   : > { %v281_v31 = vsel %vm194_vm15, %v943_v5, %v278_v29  ;;  %vm389_vm15 = vweird.f32 %v947_v10 }
  0xda   : > { %786 = vcosq.f32 %v281_v31  ;;  %v376_v36 = vor.u32 4788187, %v375_v33  ;;  %v379_v37 = vcvt.s32.f32 %v372_v32 }
  0xdb   : > { %788 = vsinq.f32 %v281_v31 }
  0xdc   : > { %v377_v34 = vand.u32 2147483647, %v376_v36 }
  0xde   : > { %v380_v39 = vmul.f32 %v379_v37, %v377_v34 }
  0xe0   : > { %v381_v43 = vxor.u32 2147483648, %v380_v39 }
  0xe2   : > { %v382_v6 = vsel %vm299_vm0, %v381_v43, %v380_v39 }
  0xe3   : > { %v385_v46 = vsel %vm298_vm1, %v947_v10, %v382_v6 }
  0xe4   : > { %v787_v45 = vpop.eup %786  ;;  %790 = vcosq.f32 %v385_v46 }
  0xe5   : > { %v789_v47 = vpop.eup %788  ;;  %v293_v24 = vxor.u32 2147483648, %v787_v45  ;;  %792 = vsinq.f32 %v385_v46 }
  0xe6   : > { %v290_v48 = vxor.u32 2147483648, %v789_v47 }
  0xe7   : > { %v294_v50 = vsel %vm292_vm3, %v293_v24, %v789_v47  ;;  %v501_v51 = vsel %vm499_vm2, %v293_v24, %v789_v47 }
  0xe8   : > { %v291_v17 = vsel %vm289_vm4, %v787_v45, %v290_v48  ;;  %v498_v52 = vsel %vm496_vm5, %v787_v45, %v290_v48 }
  0xe9   : > { %v295_v53 = vsel %vm288_vm6, %v291_v17, %v294_v50  ;;  %v502_v54 = vsel %vm495_vm7, %v498_v52, %v501_v51 }
  0xea   : > { %v296_v56 = vsel %vm285_vm8, nan, %v295_v53  ;;  %v503_v57 = vsel %vm285_vm8, nan, %v502_v54 }
  0xeb   : > { %v608_v59 = vsub.f32 %v296_v56, %v503_v57 }
  0xed   : > { %v616_v62 = vmul.f32 %v722_v58, %v608_v59 }
  0xee   : > { %v791_v63 = vpop.eup %790 }
  0xef   : > { %v618_v2 = vadd.f32 %v616_v62, %v503_v57  ;;  %v793_v3 = vpop.eup %792  ;;  %v397_v4 = vxor.u32 2147483648, %v791_v63 }
  0xf0   : > { %v394_v5 = vxor.u32 2147483648, %v793_v3 }
  0xf1   : > { %620 = vst [vmem:[%s164_s8] sm:$0xff] %v618_v2  ;;  %v398_v7 = vsel %vm396_vm9, %v397_v4, %v793_v3  ;;  %v604_v8 = vsel %vm602_vm10, %v397_v4, %v793_v3 }
  0xf2   : > { %v395_v9 = vsel %vm393_vm11, %v791_v63, %v394_v5  ;;  %v601_v11 = vsel %vm599_vm12, %v791_v63, %v394_v5 }
  0xf3   : > { %v399_v12 = vsel %vm392_vm13, %v395_v9, %v398_v7  ;;  %v605_v13 = vsel %vm598_vm14, %v601_v11, %v604_v8 }
  0xf4   : > { %v400_v14 = vsel %vm389_vm15, nan, %v399_v12  ;;  %v606_v15 = vsel %vm389_vm15, nan, %v605_v13 }
  0xf5   : > { %v609_v16 = vsub.f32 %v400_v14, %v606_v15 }
  0xf7   : > { %v617_v18 = vmul.f32 %v722_v58, %v609_v16 }
  0xf9   : > { %v619_v10 = vadd.f32 %v617_v18, %v606_v15 }
  0xfb   : > { %621 = vst [vmem:[%s164_s8 + $0x8] sm:$0xff] %v619_v10 }
  0xfc   : > { %807 = shalt.err (!%p804_p3)
}
  0xfd   : > { %s808_s27 = scalar_lea.hbm %s1013_s19, 256  ;;  %s812_s30 = scalar_lea.hbm %s1063_s3, 512 }
  0xfe   : > { %p809_p4 = scmp.ne.s32.totalorder %s1013_s19, %s808_s27  ;;  %p813_p9 = scmp.lt.u32.totalorder %s1013_s19, %s1063_s3 }
  0xff   : > { %p814_p10 = scmp.lt.u32.totalorder %s812_s30, %s808_s27  ;;  %p816_p12 = scmp.lt.u32.totalorder %s808_s27, %s1013_s19 }
 0x100   : > { %p810_p7 = pnand %p809_p4, %p926_p5 }
 0x101   : > { %p815_p11 = por %p814_p10, %p813_p9 }
 0x102   : > { %p811_p8 = pneg %p810_p7 }
 0x103   : > { %p817_p13 = por %p816_p12, %p815_p11 }
 0x105   : > { %p818_p0 = pnand %p817_p13, %p811_p8 }
 0x107   : > { %821 = shalt.err (!%p818_p0)
}
 0x108   : > { %s866_s6 = smov 128   ;;  %s867_s7 = smov 8  }
 0x109   : > { %737 = dma.vmem_to_hbm [thread:$0]  (%p926_p5), %s1015_s10, 256, %s1013_s19, %s1019_s20, %s866_s6, %s866_s6, %s867_s7  }
 0x10a PF: > { %p743_p1 = scmp.ge.s32.totalorder %s856_s15, 2  ;;  %s651_s8 = sand.u32 1, %s844_s12  }
 0x10b   : > { %s652_s9 = scalar_lea.sflag [#allocation3], %s651_s8 }
 0x10c   : > { %p740_p2 = pnand %p743_p1, %p930_p6 }
 0x10e   : > { %839 = dma.done.wait (!%p740_p2), %s652_s9, 256  }
 0x10f   : > { %841 = vsyncadd (!%p740_p2), %s652_s9, 4294967040  ;;  %p13_p3 = scmp.ge.s32.totalorder %s913_s18, 4   ;;  %s1066_s12 = smov %s848_s13 }
 0x110   : > { %s1067_s13 = smov %s852_s14  ;;  %s1068_s14 = smov %s924_s21 }
 0x111   : > { %s1069_s15 = smov %s913_s18  ;;  %15 = sbr.rel (!%p13_p3) target bundleno = 3 (0x3), region = 67 }
 0x118   :  { %657 = vsyncpa [#allocation3], 1 }
 0x119   :  { %659 = vsyncpa [#allocation3 + $0x1], 1 }

</bundles_post_ra>
